<compile_context>
chip_gen: v5e
topology: v5e:2x2
jax: 0.10.0
libtpu: 0.0.40
codegen_flags: <defaults>
</compile_context>

<pallas_src>
import functools

import jax
import jax.numpy as jnp
from jax.experimental import pallas as pl
from jax.experimental.pallas import tpu as pltpu

K_IN = 28 * 28        # 784
K_PAD = 896           # 7 * 128 (zero-padded K)
N_CLS = 10
N_PAD = 128           # lane-dense output / weight N tile
TB_MAX = 1024         # batch tile: 2 x 1024 x 896 x 2B ~= 3.5 MiB double-buffered
NEG_BIG = -1e30       # mask value for padded class lanes (avoids -inf - -inf NaNs)


def _round_up(x, m):
    return ((x + m - 1) // m) * m


def netfc_kernel(x_ref, w_ref, b_ref, o_ref):
    # x_ref: (TB, K_PAD) bf16   w_ref: (K_PAD, N_PAD) bf16
    # b_ref: (1, N_PAD)  f32    o_ref: (TB, N_PAD)    f32
    x = x_ref[...]
    w = w_ref[...]
    b = b_ref[...]

    # Linear (MXU, f32 accumulate) + bias
    logits = jnp.dot(x, w, preferred_element_type=jnp.float32) + b

    # ReLU
    z = jnp.maximum(logits, 0.0)

    # Mask the 118 padded class lanes so they don't pollute the softmax.
    lane = jax.lax.broadcasted_iota(jnp.int32, z.shape, 1)
    z = jnp.where(lane < N_CLS, z, NEG_BIG)

    # Numerically stable log_softmax over the class (lane) axis.
    m = jnp.max(z, axis=1, keepdims=True)
    shifted = z - m
    lse = jnp.log(jnp.sum(jnp.exp(shifted), axis=1, keepdims=True))
    o_ref[...] = (shifted - lse).astype(o_ref.dtype)


@functools.partial(jax.jit, static_argnames=())
def netfc_forward(x_nchw, weight, bias):
    """x_nchw: (B, 1, 28, 28) f32; weight: (10, 784) f32; bias: (10,) f32."""
    B = x_nchw.shape[0]

    # Batch tile: multiple of 8 sublanes, capped at TB_MAX; pad B up to a multiple.
    tb = min(TB_MAX, _round_up(B, 8))
    b_pad = _round_up(B, tb)
    grid = (b_pad // tb,)

    # --- wrapper-side layout plumbing (flatten, bf16 cast, zero-pad K/N/B) ---
    x_flat = x_nchw.reshape(B, K_IN).astype(jnp.bfloat16)
    x_flat = jnp.pad(x_flat, ((0, b_pad - B), (0, K_PAD - K_IN)))          # (b_pad, 896)
    w_t = jnp.pad(weight.T.astype(jnp.bfloat16),
                  ((0, K_PAD - K_IN), (0, N_PAD - N_CLS)))                 # (896, 128)
    b2d = jnp.pad(bias.astype(jnp.float32).reshape(1, N_CLS),
                  ((0, 0), (0, N_PAD - N_CLS)))                            # (1, 128)

    cost = pl.CostEstimate(
        flops=2 * b_pad * K_PAD * N_PAD,
        transcendentals=b_pad * N_PAD,
        bytes_accessed=(b_pad * K_PAD * 2) + (K_PAD * N_PAD * 2)
                       + (N_PAD * 4) + (b_pad * N_PAD * 4),
    )

    out = pl.pallas_call(
        netfc_kernel,
        out_shape=jax.ShapeDtypeStruct((b_pad, N_PAD), jnp.float32),
        grid_spec=pltpu.PrefetchScalarGridSpec(
            num_scalar_prefetch=0,
            grid=grid,
            in_specs=[
                pl.BlockSpec((tb, K_PAD), lambda i: (i, 0)),     # x: streamed per tile
                pl.BlockSpec((K_PAD, N_PAD), lambda i: (0, 0)),  # W: VMEM-resident
                pl.BlockSpec((1, N_PAD), lambda i: (0, 0)),      # b: VMEM-resident
            ],
            out_specs=pl.BlockSpec((tb, N_PAD), lambda i: (i, 0)),
        ),
        compiler_params=pltpu.CompilerParams(
            dimension_semantics=("parallel",)),                  # megacore on v7x
        cost_estimate=cost,
    )(x_flat, w_t, b2d)

    # Drop padded batch rows and padded class lanes.
    return out[:B, :N_CLS]


if __name__ == "__main__":
    key = jax.random.PRNGKey(0)
    k_x, k_w, k_b = jax.random.split(key, 3)

    B = 8
    # MNIST-style NCHW input
    x = jax.random.normal(k_x, (B, 1, 28, 28), dtype=jnp.float32)

    # nn.Linear(784, 10) default init: U(-1/sqrt(784), 1/sqrt(784)), deterministic here
    bound = 1.0 / jnp.sqrt(784.0)
    weight = jax.random.uniform(k_w, (N_CLS, K_IN), minval=-bound, maxval=bound,
                                dtype=jnp.float32)
    bias = jax.random.uniform(k_b, (N_CLS,), minval=-bound, maxval=bound,
                              dtype=jnp.float32)

    out = netfc_forward(x, weight, bias)
    out = jax.block_until_ready(out)

    # Sanity check against a pure-JAX reference (same bf16 input cast, f32 math).
    x_b = x.reshape(B, -1).astype(jnp.bfloat16).astype(jnp.float32)
    w_b = weight.astype(jnp.bfloat16).astype(jnp.float32)
    ref_logits = jnp.maximum(x_b @ w_b.T + bias, 0.0)
    ref = jax.nn.log_softmax(ref_logits, axis=1)
    assert out.shape == (B, N_CLS)
    assert jnp.allclose(out, ref, atol=1e-2, rtol=1e-2)

    print("KERNEL_OK")
</pallas_src>

<mosaic_0001>
module attributes {stable_mosaic.version = 11 : i64} {
  func.func @netfc_kernel(%arg0: i32, %arg1: memref<8x896xbf16, #tpu.memory_space<vmem>>, %arg2: memref<896x128xbf16, #tpu.memory_space<vmem>>, %arg3: memref<1x128xf32, #tpu.memory_space<vmem>>, %arg4: memref<8x128xf32, #tpu.memory_space<vmem>>) attributes {dimension_semantics = [#tpu.dimension_semantics<parallel>], iteration_bounds = array<i64: 1>, scalar_prefetch = 0 : i64, scratch_operands = 0 : i64, tpu.core_type = #tpu.core_type<tc>, window_params = [{transform_indices = @transform_0, window_bounds = array<i64: 8, 896>}, {pipeline_mode = #tpu.pipeline_mode<synchronous>, transform_indices = @transform_1, window_bounds = array<i64: 896, 128>}, {pipeline_mode = #tpu.pipeline_mode<synchronous>, transform_indices = @transform_2, window_bounds = array<i64: 1, 128>}, {transform_indices = @transform_3, window_bounds = array<i64: 8, 128>}]} {
    %c0 = arith.constant 0 : index
    %c0_0 = arith.constant 0 : index
    %0 = vector.load %arg1[%c0, %c0_0] : memref<8x896xbf16, #tpu.memory_space<vmem>>, vector<8x896xbf16>
    %c0_1 = arith.constant 0 : index
    %c0_2 = arith.constant 0 : index
    %1 = vector.load %arg2[%c0_1, %c0_2] : memref<896x128xbf16, #tpu.memory_space<vmem>>, vector<896x128xbf16>
    %c0_3 = arith.constant 0 : index
    %c0_4 = arith.constant 0 : index
    %2 = vector.load %arg3[%c0_3, %c0_4] : memref<1x128xf32, #tpu.memory_space<vmem>>, vector<1x128xf32>
    %cst = arith.constant dense<0.000000e+00> : vector<8x128xf32>
    %3 = tpu.matmul %0, %1, %cst {dimension_numbers = #tpu.dot_dimension_numbers<[1], [0], [0], [1], [0, 0, 1, 1], [], []>} : vector<8x896xbf16>, vector<896x128xbf16>, vector<8x128xf32> -> vector<8x128xf32>
    %4 = vector.broadcast %2 : vector<1x128xf32> to vector<8x128xf32>
    %5 = arith.addf %3, %4 : vector<8x128xf32>
    %cst_5 = arith.constant 0.000000e+00 : f32
    %6 = vector.broadcast %cst_5 : f32 to vector<8x128xf32>
    %7 = arith.maximumf %5, %6 : vector<8x128xf32>
    %8 = tpu.iota {dimensions = array<i32: 1>} : vector<8x128xi32>
    %c10_i32 = arith.constant 10 : i32
    %9 = vector.broadcast %c10_i32 : i32 to vector<8x128xi32>
    %10 = arith.cmpi slt, %8, %9 : vector<8x128xi32>
    %cst_6 = arith.constant -1.000000e+30 : f32
    %11 = vector.broadcast %cst_6 : f32 to vector<8x128xf32>
    %12 = arith.select %10, %7, %11 : vector<8x128xi1>, vector<8x128xf32>
    %cst_7 = arith.constant dense<0xFF800000> : vector<8xf32>
    %13 = vector.multi_reduction <maximumf>, %12, %cst_7 [1] : vector<8x128xf32> to vector<8xf32>
    %14 = vector.shape_cast %13 : vector<8xf32> to vector<8x1xf32>
    %15 = vector.broadcast %14 : vector<8x1xf32> to vector<8x128xf32>
    %16 = arith.subf %12, %15 : vector<8x128xf32>
    %17 = math.exp %16 : vector<8x128xf32>
    %cst_8 = arith.constant dense<0.000000e+00> : vector<8xf32>
    %18 = vector.multi_reduction <add>, %17, %cst_8 [1] : vector<8x128xf32> to vector<8xf32>
    %19 = vector.shape_cast %18 : vector<8xf32> to vector<8x1xf32>
    %20 = math.log %19 : vector<8x1xf32>
    %21 = vector.broadcast %20 : vector<8x1xf32> to vector<8x128xf32>
    %22 = arith.subf %16, %21 : vector<8x128xf32>
    %c0_9 = arith.constant 0 : index
    %c0_10 = arith.constant 0 : index
    %23 = vector.load %arg4[%c0_9, %c0_10] : memref<8x128xf32, #tpu.memory_space<vmem>>, vector<8x128xf32>
    tpu.vector_store %arg4[%c0_9, %c0_10], %22 {strides = array<i32>} : memref<8x128xf32, #tpu.memory_space<vmem>>, vector<8x128xf32>,
    return
  }
  func.func @transform_0(%arg0: i32) -> (i32, i32) {
    %c0_i32 = arith.constant 0 : i32
    %c0_i32_0 = arith.constant 0 : i32
    return %arg0, %c0_i32 : i32, i32
  }
  func.func @transform_1(%arg0: i32) -> (i32, i32) {
    %c0_i32 = arith.constant 0 : i32
    %c0_i32_0 = arith.constant 0 : i32
    %c0_i32_1 = arith.constant 0 : i32
    return %c0_i32, %c0_i32_0 : i32, i32
  }
  func.func @transform_2(%arg0: i32) -> (i32, i32) {
    %c0_i32 = arith.constant 0 : i32
    %c0_i32_0 = arith.constant 0 : i32
    %c0_i32_1 = arith.constant 0 : i32
    return %c0_i32, %c0_i32_0 : i32, i32
  }
  func.func @transform_3(%arg0: i32) -> (i32, i32) {
    %c0_i32 = arith.constant 0 : i32
    %c0_i32_0 = arith.constant 0 : i32
    return %arg0, %c0_i32 : i32, i32
  }
}

</mosaic_0001>

<bundles_post_ra>
// kernel: netfc_forward.1
= control target key start
LH: loop header
LB: loop body
LE: loop exit
PB: predicated region body
PF: predicated region fallthrough
CT: control target
= control target key end

     0   :  { %s1138_s0 = inlined_call_operand.vmem [shape: bf16[8,896], index: 0, kind: input, shape index: {}]   ;;  %s1139_s1 = inlined_call_operand.vmem [shape: bf16[896,128], index: 1, kind: input, shape index: {}]   ;;  %s1140_s2 = inlined_call_operand.vmem [shape: f32[1,128], index: 2, kind: input, shape index: {}]   ;;  %s1141_s3 = inlined_call_operand.hbm [shape: f32[8,128], index: 3, kind: output, shape index: {}]  }
   0x1   :  { %v850_v0 = vld [vmem:[%s1139_s1 + $0x38] sm:$0xff]  ;;  %v849_v3 = vld [vmem:[%s1139_s1 + $0x30] sm:$0xff]  ;;  %v848_v7 = vld [vmem:[%s1139_s1 + $0x28] sm:$0xff] }
   0x2   :  { %v858_v1 = vld [vmem:[%s1139_s1 + $0x78] sm:$0xff]  ;;  %496 = vmatpush.bf16.msra.mxu0 %v850_v0  ;;  %v857_v4 = vld [vmem:[%s1139_s1 + $0x70] sm:$0xff]  ;;  %v856_v8 = vld [vmem:[%s1139_s1 + $0x68] sm:$0xff] }
   0x3   :  { %v866_v2 = vld [vmem:[%s1139_s1 + $0xb8] sm:$0xff]  ;;  %509 = vmatpush.bf16.msra.mxu1 %v858_v1  ;;  %v865_v5 = vld [vmem:[%s1139_s1 + $0xb0] sm:$0xff]  ;;  %v864_v9 = vld [vmem:[%s1139_s1 + $0xa8] sm:$0xff] }
   0x4   :  { %522 = vmatpush.bf16.msra.mxu2 %v866_v2  ;;  %v874_v6 = vld [vmem:[%s1139_s1 + $0xf8] sm:$0xff]  ;;  %v873_v10 = vld [vmem:[%s1139_s1 + $0xf0] sm:$0xff]  ;;  %v847_v11 = vld [vmem:[%s1139_s1 + $0x20] sm:$0xff] }
   0x5   :  { %535 = vmatpush.bf16.msra.mxu3 %v874_v6  ;;  %v855_v12 = vld [vmem:[%s1139_s1 + $0x60] sm:$0xff]  ;;  %v872_v14 = vld [vmem:[%s1139_s1 + $0xe8] sm:$0xff]  ;;  %v846_v15 = vld [vmem:[%s1139_s1 + $0x18] sm:$0xff] }
   0x6   :  { %497 = vmatpush.bf16.msra.mxu0 %v849_v3  ;;  %v863_v13 = vld [vmem:[%s1139_s1 + $0xa0] sm:$0xff]  ;;  %v854_v16 = vld [vmem:[%s1139_s1 + $0x58] sm:$0xff] }
   0x7   :  { %510 = vmatpush.bf16.msra.mxu1 %v857_v4  ;;  %v862_v17 = vld [vmem:[%s1139_s1 + $0x98] sm:$0xff]  ;;  %v871_v18 = vld [vmem:[%s1139_s1 + $0xe0] sm:$0xff] }
   0x8   :  { %523 = vmatpush.bf16.msra.mxu2 %v865_v5 }
   0x9   :  { %536 = vmatpush.bf16.msra.mxu3 %v873_v10 }
   0xa   :  { %498 = vmatpush.bf16.msra.mxu0 %v848_v7 }
   0xb   :  { %511 = vmatpush.bf16.msra.mxu1 %v856_v8 }
   0xc   :  { %524 = vmatpush.bf16.msra.mxu2 %v864_v9 }
   0xd   :  { %537 = vmatpush.bf16.msra.mxu3 %v872_v14 }
   0xe   :  { %499 = vmatpush.bf16.msra.mxu0 %v847_v11 }
   0xf   :  { %512 = vmatpush.bf16.msra.mxu1 %v855_v12 }
  0x10   :  { %525 = vmatpush.bf16.msra.mxu2 %v863_v13 }
  0x11   :  { %8 = vsyncpa [#allocation3], 0  ;;  %v845_v19 = vld [vmem:[%s1139_s1 + $0x10] sm:$0xff]  ;;  %538 = vmatpush.bf16.msra.mxu3 %v871_v18  ;;  %v870_v22 = vld [vmem:[%s1139_s1 + $0xd8] sm:$0xff]  ;;  %s610_s27 = sshll.u32 %s1141_s3, 4  ;;  %s611_s27 = int_to_ptr.hbm [resolvable:$true] %s610_s27 }
  0x12   :  { %500 = vmatpush.bf16.msra.mxu0 %v846_v15  ;;  %v853_v20 = vld [vmem:[%s1139_s1 + $0x50] sm:$0xff]  ;;  %v844_v23 = vld [vmem:[%s1139_s1 + $0x8] sm:$0xff]  ;;  %v15_v25 = vld [vmem:[%s1138_s0] sm:$0xff] }
  0x13   :  { %513 = vmatpush.bf16.msra.mxu1 %v854_v16  ;;  %v861_v21 = vld [vmem:[%s1139_s1 + $0x90] sm:$0xff]  ;;  %v852_v24 = vld [vmem:[%s1139_s1 + $0x48] sm:$0xff]  ;;  %v139_v29 = vunpack.c.l.b16 %v15_v25  ;;  %v843_v30 = vld [vmem:[%s1139_s1] sm:$0xff]  ;;  %v140_v33 = vunpack.c.h.b16 %v15_v25  ;;  %v588_v25 = vlaneseq }
  0x14   :  { %526 = vmatpush.bf16.msra.mxu2 %v862_v17  ;;  %v860_v26 = vld [vmem:[%s1139_s1 + $0x88] sm:$0xff]  ;;  %v869_v27 = vld [vmem:[%s1139_s1 + $0xd0] sm:$0xff]  ;;  %v851_v31 = vld [vmem:[%s1139_s1 + $0x40] sm:$0xff] }
  0x15   :  { %539 = vmatpush.bf16.msra.mxu3 %v870_v22  ;;  %v16_v28 = vld [vmem:[%s1138_s0 + $0x8] sm:$0xff]  ;;  %v859_v34 = vld [vmem:[%s1139_s1 + $0x80] sm:$0xff]  ;;  %v882_v35 = vld [vmem:[%s1139_s1 + $0x138] sm:$0xff]  ;;  %v146_v38 = vpack.c.b16 %v139_v29, %v139_v29  ;;  %v147_v41 = vpack.c.b16 %v140_v33, %v140_v33 }
  0x16   :  { %501 = vmatpush.bf16.msra.mxu0 %v845_v19  ;;  %v141_v32 = vunpack.c.l.b16 %v16_v28  ;;  %v890_v36 = vld [vmem:[%s1139_s1 + $0x178] sm:$0xff]  ;;  %v868_v39 = vld [vmem:[%s1139_s1 + $0xc8] sm:$0xff]  ;;  %v881_v42 = vld [vmem:[%s1139_s1 + $0x130] sm:$0xff]  ;;  %v142_v46 = vunpack.c.h.b16 %v16_v28 }
  0x17   :  { %514 = vmatpush.bf16.msra.mxu1 %v853_v20  ;;  %v898_v37 = vld [vmem:[%s1139_s1 + $0x1b8] sm:$0xff]  ;;  %v889_v43 = vld [vmem:[%s1139_s1 + $0x170] sm:$0xff]  ;;  %v867_v45 = vld [vmem:[%s1139_s1 + $0xc0] sm:$0xff] }
  0x18   :  { %527 = vmatpush.bf16.msra.mxu2 %v861_v21  ;;  %v148_v40 = vpack.c.b16 %v141_v32, %v141_v32  ;;  %v897_v44 = vld [vmem:[%s1139_s1 + $0x1b0] sm:$0xff]  ;;  %v880_v47 = vld [vmem:[%s1139_s1 + $0x128] sm:$0xff]  ;;  %v149_v50 = vpack.c.b16 %v142_v46, %v142_v46  ;;  %v879_v51 = vld [vmem:[%s1139_s1 + $0x120] sm:$0xff] }
  0x19   :  { %540 = vmatpush.bf16.msra.mxu3 %v869_v27  ;;  %v888_v48 = vld [vmem:[%s1139_s1 + $0x168] sm:$0xff]  ;;  %v887_v52 = vld [vmem:[%s1139_s1 + $0x160] sm:$0xff]  ;;  %v878_v54 = vld [vmem:[%s1139_s1 + $0x118] sm:$0xff]  ;;  %v589_v27 = vand.u32 127, %v588_v25 }
  0x1a   :  { %502 = vmatpush.bf16.msra.mxu0 %v844_v23  ;;  %v896_v49 = vld [vmem:[%s1139_s1 + $0x1a8] sm:$0xff]  ;;  %v895_v53 = vld [vmem:[%s1139_s1 + $0x1a0] sm:$0xff]  ;;  %v886_v55 = vld [vmem:[%s1139_s1 + $0x158] sm:$0xff] }
  0x1b   :  { %515 = vmatpush.bf16.msra.mxu1 %v852_v24  ;;  %v894_v56 = vld [vmem:[%s1139_s1 + $0x198] sm:$0xff]  ;;  %v877_v57 = vld [vmem:[%s1139_s1 + $0x110] sm:$0xff]  ;;  %v876_v60 = vld [vmem:[%s1139_s1 + $0x108] sm:$0xff]  ;;  %vm590_vm0 = vcmp.lt.s32.totalorder %v589_v27, 10 }
  0x1c   :  { %528 = vmatpush.bf16.msra.mxu2 %v860_v26  ;;  %v885_v58 = vld [vmem:[%s1139_s1 + $0x150] sm:$0xff]  ;;  %v884_v62 = vld [vmem:[%s1139_s1 + $0x148] sm:$0xff]  ;;  %v18_v0 = vld [vmem:[%s1138_s0 + $0x18] sm:$0xf] }
  0x1d   :  { %541 = vmatpush.bf16.msra.mxu3 %v868_v39  ;;  %v893_v59 = vld [vmem:[%s1139_s1 + $0x190] sm:$0xff]  ;;  %v892_v63 = vld [vmem:[%s1139_s1 + $0x188] sm:$0xff]  ;;  %v875_v2 = vld [vmem:[%s1139_s1 + $0x100] sm:$0xff]  ;;  %v145_v4 = vunpack.c.l.b16 %v18_v0 }
  0x1e   :  { %503 = vmatpush.bf16.msra.mxu0 %v843_v30  ;;  %v17_v61 = vld [vmem:[%s1138_s0 + $0x10] sm:$0xff]  ;;  %v883_v5 = vld [vmem:[%s1139_s1 + $0x140] sm:$0xff] }
  0x1f   :  { %516 = vmatpush.bf16.msra.mxu1 %v851_v31  ;;  %v143_v1 = vunpack.c.l.b16 %v17_v61  ;;  %v144_v3 = vunpack.c.h.b16 %v17_v61  ;;  %v891_v6 = vld [vmem:[%s1139_s1 + $0x180] sm:$0xff]  ;;  %v152_v9 = vpack.c.b16 %v145_v4, %v145_v4  ;;  %s931_s1 = smov [#allocation2]  }
  0x20   :  { %529 = vmatpush.bf16.msra.mxu2 %v859_v34  ;;  %v900_v15 = vld [vmem:[%s1140_s2] ss:$0 sm:$0xff]  ;;  %s608_s2 = sshll.u32 %s931_s1, 4  ;;  %s609_s2 = int_to_ptr.vmem [resolvable:$true] %s608_s2 }
  0x21   :  { %504 = vmatmul.bf16.vlgmr.msra.gmra.mxu0 %v146_v38  ;;  %542 = vmatpush.bf16.msra.mxu3 %v867_v45  ;;  %v150_v7 = vpack.c.b16 %v143_v1, %v143_v1  ;;  %v151_v8 = vpack.c.b16 %v144_v3, %v144_v3 }
  0x22   :  { %548 = vmatpush.bf16.msrb.mxu0 %v882_v35  ;;  %517 = vmatmul.bf16.vlgmr.msra.gmra.mxu1 %v147_v41 }
  0x23   :  { %561 = vmatpush.bf16.msrb.mxu1 %v890_v36  ;;  %530 = vmatmul.bf16.vlgmr.msra.gmra.mxu2 %v148_v40 }
  0x24   :  { %574 = vmatpush.bf16.msrb.mxu2 %v898_v37  ;;  %543 = vmatmul.bf16.vlgmr.msra.gmra.mxu3 %v149_v50 }
  0x26   :  { %549 = vmatpush.bf16.msrb.mxu0 %v881_v42 }
  0x27   :  { %562 = vmatpush.bf16.msrb.mxu1 %v889_v43 }
  0x28   :  { %575 = vmatpush.bf16.msrb.mxu2 %v897_v44 }
  0x2a   :  { %550 = vmatpush.bf16.msrb.mxu0 %v880_v47 }
  0x2b   :  { %563 = vmatpush.bf16.msrb.mxu1 %v888_v48 }
  0x2c   :  { %576 = vmatpush.bf16.msrb.mxu2 %v896_v49 }
  0x2e   :  { %551 = vmatpush.bf16.msrb.mxu0 %v879_v51 }
  0x2f   :  { %564 = vmatpush.bf16.msrb.mxu1 %v887_v52 }
  0x30   :  { %577 = vmatpush.bf16.msrb.mxu2 %v895_v53 }
  0x32   :  { %552 = vmatpush.bf16.msrb.mxu0 %v878_v54 }
  0x33   :  { %565 = vmatpush.bf16.msrb.mxu1 %v886_v55 }
  0x34   :  { %578 = vmatpush.bf16.msrb.mxu2 %v894_v56 }
  0x36   :  { %553 = vmatpush.bf16.msrb.mxu0 %v877_v57 }
  0x37   :  { %566 = vmatpush.bf16.msrb.mxu1 %v885_v58 }
  0x38   :  { %579 = vmatpush.bf16.msrb.mxu2 %v893_v59 }
  0x3a   :  { %554 = vmatpush.bf16.msrb.mxu0 %v876_v60 }
  0x3b   :  { %567 = vmatpush.bf16.msrb.mxu1 %v884_v62 }
  0x3c   :  { %580 = vmatpush.bf16.msrb.mxu2 %v892_v63 }
  0x3e   :  { %555 = vmatpush.bf16.msrb.mxu0 %v875_v2 }
  0x3f   :  { %568 = vmatpush.bf16.msrb.mxu1 %v883_v5 }
  0x40   :  { %581 = vmatpush.bf16.msrb.mxu2 %v891_v6 }
  0x41   :  { %556 = vmatmul.bf16.vlgmr.msrb.gmra.mxu0 %v150_v7 }
  0x42   :  { %569 = vmatmul.bf16.vlgmr.msrb.gmra.mxu1 %v151_v8 }
  0x43   :  { %582 = vmatmul.bf16.vlgmr.msrb.gmra.mxu2 %v152_v9 }
  0x9e   :  { %v505_v10 = vpop.f32.mrf.mxu0 }
  0x9f   :  { %v518_v11 = vpop.f32.mrf.mxu1  ;;  %v506_v18 = vadd.f32 %v900_v15, %v505_v10 }
  0xa1   :  { %v519_v19 = vadd.f32 %v518_v11, %v506_v18 }
  0xa6   :  { %v531_v12 = vpop.f32.mrf.mxu2  ;;  %v507_v13 = vpop.f32.mrf.mxu0 }
  0xa7   :  { %v520_v14 = vpop.f32.mrf.mxu1  ;;  %v544_v16 = vpop.f32.mrf.mxu3  ;;  %v532_v21 = vadd.f32 %v531_v12, %v519_v19 }
  0xa9   :  { %v545_v22 = vadd.f32 %v544_v16, %v532_v21 }
  0xae   :  { %v533_v17 = vpop.f32.mrf.mxu2 }
  0xaf   :  { %v546_v20 = vpop.f32.mrf.mxu3 }
  0xbe   :  { %v557_v23 = vpop.f32.mrf.mxu0 }
  0xbf   :  { %v570_v24 = vpop.f32.mrf.mxu1  ;;  %v558_v26 = vadd.f32 %v557_v23, %v545_v22 }
  0xc1   :  { %v571_v28 = vadd.f32 %v570_v24, %v558_v26 }
  0xc6   :  { %v583_v29 = vpop.f32.mrf.mxu2  ;;  %v559_v31 = vpop.f32.mrf.mxu0 }
  0xc7   :  { %v584_v30 = vadd.f32 %v583_v29, %v571_v28  ;;  %v572_v32 = vpop.f32.mrf.mxu1 }
  0xc9   :  { %v587_v33 = vmax.f32 %v584_v30, 0.0 }
  0xcb   :  { %v591_v34 = vsel %vm590_vm0, %v587_v33, -1e+30 }
  0xcc   :  { %592 = vmax.xlane.f32.xlu0 %v591_v34 }
  0xce   :  { %v585_v35 = vpop.f32.mrf.mxu2 }
 0x13f   :  { %v593_v36 = vpop.xlane.xlu0 %592 }
 0x140   :  { %v594_v37 = vsub.f32 %v591_v34, %v593_v36 }
 0x142   :  { %v595_v38 = vmul.f32 1.442695, %v594_v37 }
 0x144   :  { %901 = vpow2.f32 %v595_v38 }
 0x14a   :  { %v902_v39 = vpop.eup %901 }
 0x14b   :  { %597 = vadd.xlane.f32.xlu0 %v902_v39 }
 0x1be   :  { %v598_v40 = vpop.xlane.xlu0 %597 }
 0x1bf   :  { %903 = vlog2.f32 %v598_v40 }
 0x1c5   :  { %v904_v41 = vpop.eup %903 }
 0x1c6   :  { %v600_v42 = vmul.f32 0.6931472, %v904_v41 }
 0x1c8   :  { %v601_v43 = vsub.f32 %v594_v37, %v600_v42 }
 0x1ca   :  { %602 = vst [vmem:[#allocation2] sm:$0xff] %v601_v43 }
 0x1cb   :  { %613 = dma.vmem_to_hbm [thread:$0]  %s609_s2, 128, %s611_s27, [#allocation3]  }
 0x1cc   :  { %929 = dma.done.wait [#allocation3], 128  }
 0x1cd   :  { %930 = vsyncadd [#allocation3], 4294967168 }
 0x1ce   :  { %618 = vsyncpa [#allocation3], 1 }

</bundles_post_ra>
